<compile_context>
chip_gen: v7x
topology: tpu7x:2x2x1
jax: 0.10.0
libtpu: 0.0.40
codegen_flags: <defaults>
</compile_context>

<pallas_src>
import jax
import jax.numpy as jnp
from jax.experimental import pallas as pl
from jax.experimental.pallas import tpu as pltpu


def _make_kernel(n_layers: int):
    """Fused (conv+pool+Linear0) -> ReLU -> hidden Linears -> lin_out in (features, batch) layout.

    Kernel refs (in order):
      x_ref  : (tile_b, N)   batch tile of the raw input (batch on sublanes, features on lanes)
      then n_layers pairs of (Wt (out, in), bt (out, 1)); pair 0 is the fused conv/pool/Linear0
      out_ref: (n_classes, tile_b)  lane-dense over the batch
    """

    def kernel(x_ref, *refs):
        wb = refs[:2 * n_layers]
        out_ref = refs[-1]

        # Fused conv+pool+Linear0: contract the feature axis of the (tile_b, N) tile directly
        # (no materialized transpose of x): (out0, N) x (tile_b, N) -> (out0, tile_b), f32 acc.
        h = jax.lax.dot_general(
            wb[0][...], x_ref[...],
            dimension_numbers=(((1,), (1,)), ((), ())),
            preferred_element_type=jnp.float32)
        h = h + wb[1][...]
        if n_layers == 1:                       # degenerate case: ff has only lin_out
            out_ref[...] = h.astype(out_ref.dtype)
            return
        h = jnp.maximum(h, 0.0)

        # Remaining hidden layers (ReLU): h <- relu(Wt @ h + bt); bias broadcasts over lanes.
        for li in range(1, n_layers - 1):
            Wt = wb[2 * li][...]
            bt = wb[2 * li + 1][...]
            h = jnp.maximum(jnp.dot(Wt, h, preferred_element_type=jnp.float32) + bt, 0.0)

        # Output linear (no ReLU) -> unmasked lane-dense store across the batch tile.
        out_ref[...] = (jnp.dot(wb[-2][...], h, preferred_element_type=jnp.float32)
                        + wb[-1][...]).astype(out_ref.dtype)

    return kernel


def cnn_classifier_forward(x, params, *, kernel_size: int, pool_stride: int,
                           max_tile_b: int = 2048, stream_dtype=jnp.bfloat16):
    """Returns (logits, x) matching CNNClassifier.forward semantics.

    x: (B, N) float32 -- the single conv channel of the PyTorch (B, 1, N) input, squeezed.
    params: {"conv_w": (1, K), "conv_b": (1, 1),
             "ff": [(W (in, out), b (1, out)), ...]}   (last entry = lin_out)
    """
    conv_w = params["conv_w"].astype(jnp.float32)
    conv_b = params["conv_b"].astype(jnp.float32)
    ff = params["ff"]

    B, N = x.shape
    L_conv = N - kernel_size + 1
    P = (L_conv - 1) // pool_stride + 1            # MaxPool1d(kernel_size=1, stride=s) output length
    n_layers = len(ff)
    n_classes = ff[-1][0].shape[1]

    # ---- offline fusion (tiny, done once in the wrapper) ---------------------------------------
    # Band matrix for conv + strided subsample: band[p, p*stride + k] = conv_w[k].
    p_idx = jnp.arange(P)
    band = jnp.zeros((P, N), jnp.float32)
    for k in range(kernel_size):                   # K is a small static int
        band = band.at[p_idx, p_idx * pool_stride + k].set(conv_w[0, k])

    # Fold conv+pool and the conv bias into the first FF layer:
    #   W0^T @ (band @ x + cb*1) + b0^T = (W0^T @ band) @ x + (b0^T + cb * colsum(W0)^T)
    W0 = ff[0][0].astype(jnp.float32)
    b0 = ff[0][1].astype(jnp.float32)
    w_eff = W0.T @ band                                                   # (out0, N)
    b_eff = b0.T + conv_b[0, 0] * jnp.sum(W0, axis=0, keepdims=True).T   # (out0, 1)

    # Pre-transpose remaining weights/biases for the (features, batch) layout.  Only the data that
    # contracts with the streamed x is cast to the streaming dtype; accumulation stays f32.
    wt_args = [w_eff.astype(stream_dtype), b_eff]
    for (W, b) in ff[1:]:
        wt_args += [W.T.astype(jnp.float32), b.T.astype(jnp.float32)]    # (out, in), (out, 1)

    x_stream = x.astype(stream_dtype)              # halves the dominant HBM stream when bf16

    # ---- batch tiling ---------------------------------------------------------------------------
    max_tile_b = max(128, (max_tile_b // 128) * 128)
    if B <= 256:
        tile_b = B                                 # single full-batch block (block == full dims)
    else:
        # Big, lane-aligned tiles, capped near B/2 so the "parallel" grid keeps >= 2 steps and
        # both v7x TensorCores get work (no-op on single-TC v5e/v6e).
        half_b = pl.cdiv(pl.cdiv(B, 2), 128) * 128
        tile_b = min(max_tile_b, half_b)
    grid_b = pl.cdiv(B, tile_b)

    in_specs = [pl.BlockSpec((tile_b, N), lambda i: (i, 0))]       # streamed batch tile of raw x
    for a in wt_args:
        in_specs.append(pl.BlockSpec(a.shape, lambda i: (0, 0)))   # small resident weights/biases

    # Advisory cost estimate: this kernel is HBM-bound on streaming x.
    flops = 2 * B * (w_eff.shape[0] * w_eff.shape[1]
                     + sum(W.shape[0] * W.shape[1] for (W, _) in ff[1:]))
    bytes_accessed = (B * N * x_stream.dtype.itemsize
                      + B * n_classes * 4
                      + sum(int(a.size) * a.dtype.itemsize for a in wt_args))

    logits_t = pl.pallas_call(
        _make_kernel(n_layers),
        out_shape=jax.ShapeDtypeStruct((n_classes, B), jnp.float32),
        grid=(grid_b,),
        in_specs=in_specs,
        out_specs=pl.BlockSpec((n_classes, tile_b), lambda i: (0, i)),
        compiler_params=pltpu.CompilerParams(
            dimension_semantics=("parallel",),          # megacore sharding on v7x
            vmem_limit_bytes=32 * 1024 * 1024,          # explicit, portable across v5e/v6e/v7x
        ),
        cost_estimate=pl.CostEstimate(
            flops=int(flops), bytes_accessed=int(bytes_accessed), transcendentals=0),
    )(x_stream, *wt_args)

    logits = logits_t.T                                 # (B, n_classes); tiny layout plumbing only
    return logits, x


def _reference_forward(x, params, *, kernel_size: int, pool_stride: int):
    """Pure-JAX reference mirroring the PyTorch module, for a sanity check."""
    conv_w, conv_b, ff = params["conv_w"], params["conv_b"], params["ff"]
    B, N = x.shape
    L_conv = N - kernel_size + 1
    c = jnp.zeros((B, L_conv), jnp.float32)
    for k in range(kernel_size):
        c = c + conv_w[0, k] * x[:, k:k + L_conv]
    c = c + conv_b[0, 0]
    h = c[:, ::pool_stride]                        # MaxPool1d(kernel=1, stride=s) == subsampling
    for (W, b) in ff[:-1]:
        h = jnp.maximum(h @ W + b, 0.0)
    W_out, b_out = ff[-1]
    return h @ W_out + b_out, x


if __name__ == "__main__":
    key = jax.random.PRNGKey(0)

    # Small shapes consistent with the PyTorch __init__ / forward.
    B = 2
    n_samples = 16
    kernel_size = 3
    pool_stride = 2
    n_weights = [32, 32]
    n_classes = 4

    L_conv = n_samples - kernel_size + 1           # 14
    P = (L_conv - 1) // pool_stride + 1            # 7 = FF input size (matches the dummy forward)

    keys = jax.random.split(key, 16)
    ki = iter(keys)

    conv_w = 0.5 * jax.random.normal(next(ki), (1, kernel_size), dtype=jnp.float32)
    conv_b = 0.1 * jax.random.normal(next(ki), (1, 1), dtype=jnp.float32)

    dims = [P] + n_weights
    ff = []
    for n_in, n_out in zip(dims, n_weights):
        W = jax.random.normal(next(ki), (n_in, n_out), dtype=jnp.float32) / jnp.sqrt(n_in)
        b = 0.1 * jax.random.normal(next(ki), (1, n_out), dtype=jnp.float32)
        ff.append((W, b))
    W_out = jax.random.normal(next(ki), (dims[-1], n_classes), dtype=jnp.float32) / jnp.sqrt(dims[-1])
    b_out = 0.1 * jax.random.normal(next(ki), (1, n_classes), dtype=jnp.float32)
    ff.append((W_out, b_out))

    params = {"conv_w": conv_w, "conv_b": conv_b, "ff": ff}

    x = jax.random.normal(next(ki), (B, n_samples), dtype=jnp.float32)

    ref_logits, ref_x_in = _reference_forward(
        x, params, kernel_size=kernel_size, pool_stride=pool_stride)

    # f32 streaming path: tight numerical check of the fused conv/pool/FF kernel.
    logits_f32, x_in = cnn_classifier_forward(
        x, params, kernel_size=kernel_size, pool_stride=pool_stride,
        stream_dtype=jnp.float32)
    jax.block_until_ready((logits_f32, x_in))
    assert logits_f32.shape == (B, n_classes)
    assert x_in.shape == (B, n_samples)
    assert jnp.allclose(logits_f32, ref_logits, atol=1e-4, rtol=1e-4)
    assert jnp.allclose(x_in, ref_x_in)

    # Default bf16 streaming path (halves the dominant HBM stream); looser tolerance vs f32 ref.
    logits_bf16, _ = cnn_classifier_forward(
        x, params, kernel_size=kernel_size, pool_stride=pool_stride)
    jax.block_until_ready(logits_bf16)
    assert logits_bf16.shape == (B, n_classes)
    assert jnp.allclose(logits_bf16, ref_logits, atol=5e-2, rtol=5e-2)

    print("KERNEL_OK")
</pallas_src>

<mosaic_0001>
module attributes {stable_mosaic.version = 11 : i64} {
  func.func @kernel(%arg0: i32, %arg1: memref<2x16xf32, #tpu.memory_space<vmem>>, %arg2: memref<32x16xf32, #tpu.memory_space<vmem>>, %arg3: memref<32x1xf32, #tpu.memory_space<vmem>>, %arg4: memref<32x32xf32, #tpu.memory_space<vmem>>, %arg5: memref<32x1xf32, #tpu.memory_space<vmem>>, %arg6: memref<4x32xf32, #tpu.memory_space<vmem>>, %arg7: memref<4x1xf32, #tpu.memory_space<vmem>>, %arg8: memref<4x2xf32, #tpu.memory_space<vmem>>) attributes {dimension_semantics = [#tpu.dimension_semantics<parallel>], iteration_bounds = array<i64: 1>, scalar_prefetch = 0 : i64, scratch_operands = 0 : i64, tpu.core_type = #tpu.core_type<tc>, window_params = [{transform_indices = @transform_0, window_bounds = array<i64: 2, 16>}, {pipeline_mode = #tpu.pipeline_mode<synchronous>, transform_indices = @transform_1, window_bounds = array<i64: 32, 16>}, {pipeline_mode = #tpu.pipeline_mode<synchronous>, transform_indices = @transform_2, window_bounds = array<i64: 32, 1>}, {pipeline_mode = #tpu.pipeline_mode<synchronous>, transform_indices = @transform_3, window_bounds = array<i64: 32, 32>}, {pipeline_mode = #tpu.pipeline_mode<synchronous>, transform_indices = @transform_4, window_bounds = array<i64: 32, 1>}, {pipeline_mode = #tpu.pipeline_mode<synchronous>, transform_indices = @transform_5, window_bounds = array<i64: 4, 32>}, {pipeline_mode = #tpu.pipeline_mode<synchronous>, transform_indices = @transform_6, window_bounds = array<i64: 4, 1>}, {transform_indices = @transform_7, window_bounds = array<i64: 4, 2>}]} {
    %c0 = arith.constant 0 : index
    %c0_0 = arith.constant 0 : index
    %0 = vector.load %arg2[%c0, %c0_0] : memref<32x16xf32, #tpu.memory_space<vmem>>, vector<32x16xf32>
    %c0_1 = arith.constant 0 : index
    %c0_2 = arith.constant 0 : index
    %1 = vector.load %arg1[%c0_1, %c0_2] : memref<2x16xf32, #tpu.memory_space<vmem>>, vector<2x16xf32>
    %cst = arith.constant dense<0.000000e+00> : vector<32x2xf32>
    %2 = tpu.matmul %0, %1, %cst {dimension_numbers = #tpu.dot_dimension_numbers<[1], [1], [0], [0], [0, 0, 1, 0], [], []>} : vector<32x16xf32>, vector<2x16xf32>, vector<32x2xf32> -> vector<32x2xf32>
    %c0_3 = arith.constant 0 : index
    %c0_4 = arith.constant 0 : index
    %3 = vector.load %arg3[%c0_3, %c0_4] : memref<32x1xf32, #tpu.memory_space<vmem>>, vector<32x1xf32>
    %4 = vector.broadcast %3 : vector<32x1xf32> to vector<32x2xf32>
    %5 = arith.addf %2, %4 : vector<32x2xf32>
    %cst_5 = arith.constant 0.000000e+00 : f32
    %6 = vector.broadcast %cst_5 : f32 to vector<32x2xf32>
    %7 = arith.maximumf %5, %6 : vector<32x2xf32>
    %c0_6 = arith.constant 0 : index
    %c0_7 = arith.constant 0 : index
    %8 = vector.load %arg4[%c0_6, %c0_7] : memref<32x32xf32, #tpu.memory_space<vmem>>, vector<32x32xf32>
    %c0_8 = arith.constant 0 : index
    %c0_9 = arith.constant 0 : index
    %9 = vector.load %arg5[%c0_8, %c0_9] : memref<32x1xf32, #tpu.memory_space<vmem>>, vector<32x1xf32>
    %cst_10 = arith.constant dense<0.000000e+00> : vector<32x2xf32>
    %10 = tpu.matmul %8, %7, %cst_10 {dimension_numbers = #tpu.dot_dimension_numbers<[1], [0], [0], [1], [0, 0, 1, 1], [], []>} : vector<32x32xf32>, vector<32x2xf32>, vector<32x2xf32> -> vector<32x2xf32>
    %11 = vector.broadcast %9 : vector<32x1xf32> to vector<32x2xf32>
    %12 = arith.addf %10, %11 : vector<32x2xf32>
    %cst_11 = arith.constant 0.000000e+00 : f32
    %13 = vector.broadcast %cst_11 : f32 to vector<32x2xf32>
    %14 = arith.maximumf %12, %13 : vector<32x2xf32>
    %c0_12 = arith.constant 0 : index
    %c0_13 = arith.constant 0 : index
    %15 = vector.load %arg6[%c0_12, %c0_13] : memref<4x32xf32, #tpu.memory_space<vmem>>, vector<4x32xf32>
    %cst_14 = arith.constant dense<0.000000e+00> : vector<4x2xf32>
    %16 = tpu.matmul %15, %14, %cst_14 {dimension_numbers = #tpu.dot_dimension_numbers<[1], [0], [0], [1], [0, 0, 1, 1], [], []>} : vector<4x32xf32>, vector<32x2xf32>, vector<4x2xf32> -> vector<4x2xf32>
    %c0_15 = arith.constant 0 : index
    %c0_16 = arith.constant 0 : index
    %17 = vector.load %arg7[%c0_15, %c0_16] : memref<4x1xf32, #tpu.memory_space<vmem>>, vector<4x1xf32>
    %18 = vector.broadcast %17 : vector<4x1xf32> to vector<4x2xf32>
    %19 = arith.addf %16, %18 : vector<4x2xf32>
    %c0_17 = arith.constant 0 : index
    %c0_18 = arith.constant 0 : index
    %20 = vector.load %arg8[%c0_17, %c0_18] : memref<4x2xf32, #tpu.memory_space<vmem>>, vector<4x2xf32>
    tpu.vector_store %arg8[%c0_17, %c0_18], %19 {strides = array<i32>} : memref<4x2xf32, #tpu.memory_space<vmem>>, vector<4x2xf32>,
    return
  }
  func.func @transform_0(%arg0: i32) -> (i32, i32) {
    %c0_i32 = arith.constant 0 : i32
    %c0_i32_0 = arith.constant 0 : i32
    return %arg0, %c0_i32 : i32, i32
  }
  func.func @transform_1(%arg0: i32) -> (i32, i32) {
    %c0_i32 = arith.constant 0 : i32
    %c0_i32_0 = arith.constant 0 : i32
    %c0_i32_1 = arith.constant 0 : i32
    return %c0_i32, %c0_i32_0 : i32, i32
  }
  func.func @transform_2(%arg0: i32) -> (i32, i32) {
    %c0_i32 = arith.constant 0 : i32
    %c0_i32_0 = arith.constant 0 : i32
    %c0_i32_1 = arith.constant 0 : i32
    return %c0_i32, %c0_i32_0 : i32, i32
  }
  func.func @transform_3(%arg0: i32) -> (i32, i32) {
    %c0_i32 = arith.constant 0 : i32
    %c0_i32_0 = arith.constant 0 : i32
    %c0_i32_1 = arith.constant 0 : i32
    return %c0_i32, %c0_i32_0 : i32, i32
  }
  func.func @transform_4(%arg0: i32) -> (i32, i32) {
    %c0_i32 = arith.constant 0 : i32
    %c0_i32_0 = arith.constant 0 : i32
    %c0_i32_1 = arith.constant 0 : i32
    return %c0_i32, %c0_i32_0 : i32, i32
  }
  func.func @transform_5(%arg0: i32) -> (i32, i32) {
    %c0_i32 = arith.constant 0 : i32
    %c0_i32_0 = arith.constant 0 : i32
    %c0_i32_1 = arith.constant 0 : i32
    return %c0_i32, %c0_i32_0 : i32, i32
  }
  func.func @transform_6(%arg0: i32) -> (i32, i32) {
    %c0_i32 = arith.constant 0 : i32
    %c0_i32_0 = arith.constant 0 : i32
    %c0_i32_1 = arith.constant 0 : i32
    return %c0_i32, %c0_i32_0 : i32, i32
  }
  func.func @transform_7(%arg0: i32) -> (i32, i32) {
    %c0_i32 = arith.constant 0 : i32
    %c0_i32_0 = arith.constant 0 : i32
    return %c0_i32, %arg0 : i32, i32
  }
}

</mosaic_0001>

<bundles_post_ra>
// kernel: tpu_custom_call.1
= control target key start
LH: loop header
LB: loop body
LE: loop exit
PB: predicated region body
PF: predicated region fallthrough
CT: control target
= control target key end

     0   :  { %vm55_vm0 = vcmask 130048   ;;  %v457_v2 = vmov 0   ;;  %vm188_vm1 = vcmask 261120   ;;  %v458_v37 = vmov 0.0|0.0   ;;  %s572_s0 = inlined_call_operand.vmem [shape: f32[2,16], index: 0, kind: input, shape index: {}]   ;;  %s573_s1 = inlined_call_operand.vmem [shape: f32[32,16], index: 1, kind: input, shape index: {}]   ;;  %s574_s2 = inlined_call_operand.vmem [shape: f32[32,1], index: 2, kind: input, shape index: {}]   ;;  %s575_s4 = inlined_call_operand.vmem [shape: f32[32,1], index: 4, kind: input, shape index: {}]   ;;  %s576_s6 = inlined_call_operand.vmem [shape: f32[4,1], index: 6, kind: input, shape index: {}]   ;;  %s577_s3 = inlined_call_operand.vmem [shape: f32[32,32], index: 3, kind: input, shape index: {}]   ;;  %s578_s5 = inlined_call_operand.vmem [shape: f32[4,32], index: 5, kind: input, shape index: {}]   ;;  %s579_s7 = inlined_call_operand.vmem [shape: f32[4,2], index: 7, kind: output, shape index: {}]  }
   0x1   :  { %v30_v0 = vld [vmem:[%s572_s0] sm:$0x3]  ;;  %455 = vset.pattern.permute.xlu0 %v457_v2  ;;  %456 = vset.pattern.permute.xlu1 %v457_v2  ;;  %v27_v4 = vld [vmem:[%s573_s1 + $0x8] sm:$0xff]  ;;  %v33_v5 = vld [vmem:[%s574_s2 + $0x10] sm:$0xff]  ;;  %vm459_vm2 = vmmov 0   ;;  %v460_v38 = vmov 0.0  }
   0x2   :  { %v26_v1 = vld [vmem:[%s573_s1] sm:$0xff]  ;;  %404 = vmatprep.subr.msk.mxu0 %vm55_vm0, %v30_v0  ;;  %v28_v6 = vld [vmem:[%s573_s1 + $0x10] sm:$0xff]  ;;  %v32_v7 = vld [vmem:[%s574_s2 + $0x8] sm:$0xff]  ;;  %47 = vperm.xlu1 %456, %v33_v5   ;;  %vm370_vm3 = vcmask 11264  }
   0x3   :  { %406 = vmatprep.mubr.msk.f32.mxu0 %vm55_vm0, %v26_v1  ;;  %v31_v3 = vld [vmem:[%s574_s2] sm:$0xff]  ;;  %405 = vmatpush3.xpose.msk.msra.mxu0 %vm55_vm0, %v30_v0  ;;  %v34_v8 = vld [vmem:[%s574_s2 + $0x18] sm:$0xff]  ;;  %v165_v11 = vld [vmem:[%s575_s4 + $0x8] sm:$0xff] }
   0x4   :  { %37 = vperm.xlu0 %455, %v31_v3   ;;  %v29_v9 = vld [vmem:[%s573_s1 + $0x18] sm:$0xff]  ;;  %v164_v10 = vld [vmem:[%s575_s4] sm:$0xff]  ;;  %v166_v12 = vld [vmem:[%s575_s4 + $0x10] sm:$0xff]  ;;  %445 = vmatprep.subr.bf16.mxu0 %v458_v37 }
   0x5   :  { %v167_v13 = vld [vmem:[%s575_s4 + $0x18] sm:$0xff]  ;;  %v291_v14 = vld [vmem:[%s576_s6] sm:$0xf]  ;;  %v161_v34 = vld [vmem:[%s577_s3 + $0x8] sm:$0xff] }
   0x6   :  { %407 = vmatmul.mubr.msk.f32.vlgmr.msra.gmra.mrb[0].mxu0 %vm55_vm0, %v27_v4  ;;  %52 = vperm.xlu1 %456, %v34_v8   ;;  %v160_v15 = vld [vmem:[%s577_s3] sm:$0xff]  ;;  %v162_v35 = vld [vmem:[%s577_s3 + $0x10] sm:$0xff]  ;;  %v163_v36 = vld [vmem:[%s577_s3 + $0x18] sm:$0xff] }
   0x7   :  { %409 = vmatprep.mubr.msk.f32.mxu0 %vm55_vm0, %v28_v6  ;;  %420 = vmatprep.mubr.msk.f32.mxu1 %vm188_vm1, %v160_v15  ;;  %v290_v57 = vld [vmem:[%s578_s5] sm:$0xf] }
   0x8   :  { %42 = vperm.xlu0 %455, %v32_v7  }
   0xa   :  { %410 = vmatmul.mubr.msk.f32.gmra.mrb[2].mxu0 %vm55_vm0, %v29_v9  ;;  %175 = vperm.xlu1 %456, %v165_v11  }
   0xb   :  { %434 = vmatprep.mubr.msk.f32.mxu0 %vm459_vm2, %v460_v38 }
   0xc   :  { %170 = vperm.xlu0 %455, %v164_v10  }
   0xe   :  { %185 = vperm.xlu1 %456, %v167_v13  }
  0x10   :  { %180 = vperm.xlu0 %455, %v166_v12  }
  0x14   :  { %294 = vperm.xlu0 %455, %v291_v14  }
  0x81   :  { %v48_v17 = vpop.permute.xlu1 %47 }
  0x83   :  { %v38_v16 = vpop.permute.xlu0 %37 }
  0x85   :  { %v53_v24 = vpop.permute.xlu1 %52 }
  0x87   :  { %v43_v18 = vpop.permute.xlu0 %42 }
  0x89   :  { %v176_v39 = vpop.permute.xlu1 %175 }
  0x8b   :  { %v171_v40 = vpop.permute.xlu0 %170 }
  0x8d   :  { %v186_v46 = vpop.permute.xlu1 %185 }
  0x8f   :  { %v181_v49 = vpop.permute.xlu0 %180 }
  0x93   :  { %v295_v58 = vpop.permute.xlu0 %294 }
  0xd9   :  { %v408_v19 = vpop.f32.mrb[0].mxu0 }
  0xda   :  { %v143_v20 = vadd.f32 %v408_v19, %v43_v18  ;;  %v137_v21 = vpop.f32.mrb[1].mxu0 }
  0xdb   :  { %v138_v22 = vadd.f32 %v137_v21, %v38_v16 }
  0xdc   :  { %v157_v23 = vmax.f32 %v143_v20, 0.0 }
  0xdd   :  { %v156_v25 = vmax.f32 %v138_v22, 0.0  ;;  %v411_v26 = vpop.f32.mrb[2].mxu0 }
  0xde   :  { %v153_v27 = vadd.f32 %v411_v26, %v53_v24  ;;  %v147_v28 = vpop.f32.mrb[3].mxu0 }
  0xdf   :  { %v148_v29 = vadd.f32 %v147_v28, %v48_v17  ;;  %v437_v30 = vpack.c.bf16 %v157_v23, %v156_v25 }
  0xe0   :  { %v159_v31 = vmax.f32 %v153_v27, 0.0 }
  0xe1   :  { %v158_v32 = vmax.f32 %v148_v29, 0.0  ;;  %438 = vmatprep.subr.bf16.mxu1 %v437_v30 }
  0xe2   :  { %440 = vmatpush3.bf16.msra.mxu1 %v437_v30 }
  0xe3   :  { %v441_v33 = vpack.c.bf16 %v159_v31, %v158_v32 }
  0xe5   :  { %442 = vmatprep.subr.bf16.mxu1 %v441_v33 }
  0xe6   :  { %444 = vmatpush3.bf16.msra.mxu1 %v441_v33 }
  0xe9   :  { %421 = vmatmul.mubr.msk.f32.vlgmr.msra.gmra.mrb[0].mxu1 %vm188_vm1, %v161_v34 }
  0xea   :  { %423 = vmatprep.mubr.msk.f32.mxu1 %vm188_vm1, %v162_v35 }
  0xed   :  { %424 = vmatmul.mubr.msk.f32.gmra.mrb[2].mxu1 %vm188_vm1, %v163_v36 }
 0x1bc   :  { %v422_v41 = vpop.f32.mrb[0].mxu1 }
 0x1bd   :  { %v273_v42 = vadd.f32 %v422_v41, %v176_v39  ;;  %v267_v43 = vpop.f32.mrb[1].mxu1 }
 0x1be   :  { %v268_v44 = vadd.f32 %v267_v43, %v171_v40 }
 0x1bf   :  { %v287_v45 = vmax.f32 %v273_v42, 0.0 }
 0x1c0   :  { %v286_v47 = vmax.f32 %v268_v44, 0.0  ;;  %v425_v48 = vpop.f32.mrb[2].mxu1 }
 0x1c1   :  { %v283_v50 = vadd.f32 %v425_v48, %v186_v46  ;;  %v277_v51 = vpop.f32.mrb[3].mxu1 }
 0x1c2   :  { %v446_v52 = vpack.c.bf16 %v287_v45, %v286_v47  ;;  %v278_v53 = vadd.f32 %v277_v51, %v181_v49 }
 0x1c3   :  { %v289_v54 = vmax.f32 %v283_v50, 0.0 }
 0x1c4   :  { %v288_v55 = vmax.f32 %v278_v53, 0.0  ;;  %447 = vmatpush3.bf16.msra.mxu0 %v446_v52 }
 0x1c5   :  { %448 = vmatprep.subr.bf16.mxu0 %v458_v37 }
 0x1c6   :  { %v449_v56 = vpack.c.bf16 %v289_v54, %v288_v55 }
 0x1c8   :  { %450 = vmatpush3.bf16.msra.mxu0 %v449_v56 }
 0x1cb   :  { %435 = vmatmul.mubr.msk.f32.vlgmr.msra.gmra.mrb[4].mxu0 %vm188_vm1, %v290_v57 }
 0x29e   :  { %v366_v59 = vpop.f32.mrb[4].mxu0 }
 0x29f   :  { %v367_v60 = vadd.f32 %v366_v59, %v295_v58  ;;  %v436_v61 = vpop.f32.mrb[5].mxu0 }
 0x2a1   :  { %371 = vst.msk [vmem:[%s579_s7] sm:$0xf] %vm370_vm3, %v367_v60 }

</bundles_post_ra>
